<compile_context>
chip_gen: v7x
topology: tpu7x:2x2x1
jax: 0.10.0
libtpu: 0.0.40
codegen_flags: <defaults>
</compile_context>

<pallas_src>
from functools import partial

import jax
import jax.numpy as jnp
from jax.experimental import pallas as pl
from jax.experimental.pallas import tpu as pltpu


def _round_up(x, m):
    return (x + m - 1) // m * m


def _cdiv(a, b):
    return -(-a // b)


def _choose_tiling(batch):
    """Pick (rows_per_tile, n_grid_steps) for the batch axis."""
    b8 = _round_up(batch, 8)
    if b8 <= 8:
        return b8, 1
    # >=2 steps so v7x megacore can shard the "parallel" batch axis; cap the
    # tile at 1024 rows (step-overhead amortization vs VMEM footprint), and
    # derive TB from B so row padding stays < n_steps*8 rows.
    n_steps = max(2, _cdiv(b8, 1024))
    tb = _round_up(_cdiv(b8, n_steps), 8)
    return tb, n_steps


def receiver_kernel(x_ref, w3_ref, b3_ref, w4_ref, b4_ref, out_ref):
    # fc3: bf16 MXU matmul, f32 accumulate; bias + relu in f32 on the VPU.
    h = jnp.dot(x_ref[...], w3_ref[...], preferred_element_type=jnp.float32)
    h = jnp.maximum(h + b3_ref[...], 0.0)
    # fc4: bf16 MXU matmul (K padded to 512), f32 accumulate; bias in f32.
    o = jnp.dot(h.astype(jnp.bfloat16), w4_ref[...],
                preferred_element_type=jnp.float32)
    o = o + b4_ref[...]
    # sigmoid(o) = 1 / (1 + exp(-o)): exp on EUP, approx reciprocal on EUP.
    # Clamp the approx-reciprocal overshoot so the probability never exceeds
    # 1.0 (keeps a downstream BCE's log(1-p) finite).
    p = pl.reciprocal(1.0 + jnp.exp(-o), approx=True)
    p = jnp.minimum(p, 1.0)
    out_ref[...] = p.astype(out_ref.dtype)


def prepare_params(w3_t, b3, w4_t, b4):
    """One-time prep: pad hidden dim 400->512 and cast weights to bf16.

    w3_t: [M, 400], b3: [400], w4_t: [400, 784], b4: [784]
    Padding is exact: padded hidden columns see relu(0 + 0) = 0 and the
    corresponding zero rows of w4 contribute nothing to the output.
    """
    m, h = w3_t.shape
    h_pad = _round_up(h, 128)  # 400 -> 512
    w3_p = jnp.pad(w3_t, ((0, 0), (0, h_pad - h))).astype(jnp.bfloat16)
    b3_p = jnp.pad(b3.reshape(1, -1), ((0, 0), (0, h_pad - h))).astype(jnp.float32)
    w4_p = jnp.pad(w4_t, ((0, h_pad - h), (0, 0))).astype(jnp.bfloat16)
    b4_p = b4.reshape(1, -1).astype(jnp.float32)
    return w3_p, b3_p, w4_p, b4_p


@partial(jax.jit, static_argnames=("out_dtype",))
def receiver_forward(x, w3_p, b3_p, w4_p, b4_p, out_dtype=jnp.bfloat16):
    """x: [B, M] f32; prepped params from prepare_params()."""
    batch, m = x.shape
    _, h_pad = w3_p.shape
    _, out_dim = w4_p.shape  # 784 (unpadded -> lane-masked tail store only)

    tb, n_steps = _choose_tiling(batch)
    b_pad = tb * n_steps

    x_p = x.astype(jnp.bfloat16)
    if b_pad != batch:
        x_p = jnp.pad(x_p, ((0, b_pad - batch), (0, 0)))

    out = pl.pallas_call(
        receiver_kernel,
        out_shape=jax.ShapeDtypeStruct((b_pad, out_dim), out_dtype),
        grid_spec=pltpu.PrefetchScalarGridSpec(
            num_scalar_prefetch=0,
            grid=(n_steps,),
            in_specs=[
                pl.BlockSpec((tb, m), lambda i: (i, 0)),          # x: streamed
                pl.BlockSpec((m, h_pad), lambda i: (0, 0)),       # w3: resident
                pl.BlockSpec((1, h_pad), lambda i: (0, 0)),       # b3: resident
                pl.BlockSpec((h_pad, out_dim), lambda i: (0, 0)), # w4: resident
                pl.BlockSpec((1, out_dim), lambda i: (0, 0)),     # b4: resident
            ],
            out_specs=pl.BlockSpec((tb, out_dim), lambda i: (i, 0)),
        ),
        compiler_params=pltpu.CompilerParams(
            dimension_semantics=("parallel",),
            # Headroom for TB up to 1024 (f32 intermediates + double-buffered
            # bf16 I/O); stays well under v7x's 64 MiB physical VMEM.
            vmem_limit_bytes=48 * 1024 * 1024,
        ),
    )(x_p, w3_p, b3_p, w4_p, b4_p)

    if b_pad != batch:
        out = out[:batch]
    return out


def init_params(key, message_dim):
    """Deterministic init mirroring PyTorch nn.Linear default U(-1/sqrt(in), 1/sqrt(in))."""
    k1, k2, k3, k4 = jax.random.split(key, 4)
    lim3 = 1.0 / jnp.sqrt(jnp.float32(message_dim))
    lim4 = 1.0 / jnp.sqrt(jnp.float32(400))
    # Stored in [in, out] layout (W^T relative to PyTorch's [out, in]).
    w3_t = jax.random.uniform(k1, (message_dim, 400), jnp.float32, -lim3, lim3)
    b3 = jax.random.uniform(k2, (400,), jnp.float32, -lim3, lim3)
    w4_t = jax.random.uniform(k3, (400, 784), jnp.float32, -lim4, lim4)
    b4 = jax.random.uniform(k4, (784,), jnp.float32, -lim4, lim4)
    return w3_t, b3, w4_t, b4


if __name__ == "__main__":
    message_dim = 32
    batch = 8

    key = jax.random.PRNGKey(0)
    kx, kp = jax.random.split(key)
    x = jax.random.normal(kx, (batch, message_dim), jnp.float32)
    w3_t, b3, w4_t, b4 = init_params(kp, message_dim)

    # One-time weight prep (pad + bf16 cast), reused across forward calls.
    w3_p, b3_p, w4_p, b4_p = prepare_params(w3_t, b3, w4_t, b4)

    out = receiver_forward(x, w3_p, b3_p, w4_p, b4_p)
    out = jax.block_until_ready(out)

    # Sanity check against a pure-JAX f32 reference. Tolerance covers bf16
    # MXU inputs, the approximate-reciprocal sigmoid, and the bf16 output.
    ref = jax.nn.sigmoid(jnp.maximum(x @ w3_t + b3, 0.0) @ w4_t + b4)
    assert out.shape == (batch, 784)
    assert out.dtype == jnp.bfloat16
    max_err = float(jnp.max(jnp.abs(out.astype(jnp.float32) - ref)))
    assert max_err < 2e-2, f"max_err={max_err}"
    assert float(jnp.max(out.astype(jnp.float32))) <= 1.0  # BCE-safe probabilities

    print("KERNEL_OK")
</pallas_src>

<mosaic_0001>
module attributes {stable_mosaic.version = 11 : i64} {
  func.func @receiver_kernel(%arg0: i32, %arg1: memref<8x32xbf16, #tpu.memory_space<vmem>>, %arg2: memref<32x512xbf16, #tpu.memory_space<vmem>>, %arg3: memref<1x512xf32, #tpu.memory_space<vmem>>, %arg4: memref<512x784xbf16, #tpu.memory_space<vmem>>, %arg5: memref<1x784xf32, #tpu.memory_space<vmem>>, %arg6: memref<8x784xbf16, #tpu.memory_space<vmem>>) attributes {dimension_semantics = [#tpu.dimension_semantics<parallel>], iteration_bounds = array<i64: 1>, scalar_prefetch = 0 : i64, scratch_operands = 0 : i64, tpu.core_type = #tpu.core_type<tc>, window_params = [{transform_indices = @transform_0, window_bounds = array<i64: 8, 32>}, {pipeline_mode = #tpu.pipeline_mode<synchronous>, transform_indices = @transform_1, window_bounds = array<i64: 32, 512>}, {pipeline_mode = #tpu.pipeline_mode<synchronous>, transform_indices = @transform_2, window_bounds = array<i64: 1, 512>}, {pipeline_mode = #tpu.pipeline_mode<synchronous>, transform_indices = @transform_3, window_bounds = array<i64: 512, 784>}, {pipeline_mode = #tpu.pipeline_mode<synchronous>, transform_indices = @transform_4, window_bounds = array<i64: 1, 784>}, {transform_indices = @transform_5, window_bounds = array<i64: 8, 784>}]} {
    %c0 = arith.constant 0 : index
    %c0_0 = arith.constant 0 : index
    %0 = vector.load %arg1[%c0, %c0_0] : memref<8x32xbf16, #tpu.memory_space<vmem>>, vector<8x32xbf16>
    %c0_1 = arith.constant 0 : index
    %c0_2 = arith.constant 0 : index
    %1 = vector.load %arg2[%c0_1, %c0_2] : memref<32x512xbf16, #tpu.memory_space<vmem>>, vector<32x512xbf16>
    %cst = arith.constant dense<0.000000e+00> : vector<8x512xf32>
    %2 = tpu.matmul %0, %1, %cst {dimension_numbers = #tpu.dot_dimension_numbers<[1], [0], [0], [1], [0, 0, 1, 1], [], []>} : vector<8x32xbf16>, vector<32x512xbf16>, vector<8x512xf32> -> vector<8x512xf32>
    %c0_3 = arith.constant 0 : index
    %c0_4 = arith.constant 0 : index
    %3 = vector.load %arg3[%c0_3, %c0_4] : memref<1x512xf32, #tpu.memory_space<vmem>>, vector<1x512xf32>
    %4 = vector.broadcast %3 : vector<1x512xf32> to vector<8x512xf32>
    %5 = arith.addf %2, %4 : vector<8x512xf32>
    %cst_5 = arith.constant 0.000000e+00 : f32
    %6 = vector.broadcast %cst_5 : f32 to vector<8x512xf32>
    %7 = arith.maximumf %5, %6 : vector<8x512xf32>
    %8 = arith.truncf %7 : vector<8x512xf32> to vector<8x512xbf16>
    %c0_6 = arith.constant 0 : index
    %c0_7 = arith.constant 0 : index
    %9 = vector.load %arg4[%c0_6, %c0_7] : memref<512x784xbf16, #tpu.memory_space<vmem>>, vector<512x784xbf16>
    %cst_8 = arith.constant dense<0.000000e+00> : vector<8x784xf32>
    %10 = tpu.matmul %8, %9, %cst_8 {dimension_numbers = #tpu.dot_dimension_numbers<[1], [0], [0], [1], [0, 0, 1, 1], [], []>} : vector<8x512xbf16>, vector<512x784xbf16>, vector<8x784xf32> -> vector<8x784xf32>
    %c0_9 = arith.constant 0 : index
    %c0_10 = arith.constant 0 : index
    %11 = vector.load %arg5[%c0_9, %c0_10] : memref<1x784xf32, #tpu.memory_space<vmem>>, vector<1x784xf32>
    %12 = vector.broadcast %11 : vector<1x784xf32> to vector<8x784xf32>
    %13 = arith.addf %10, %12 : vector<8x784xf32>
    %cst_11 = arith.constant 0.000000e+00 : f32
    %14 = vector.broadcast %cst_11 : f32 to vector<8x784xf32>
    %15 = arith.subf %14, %13 : vector<8x784xf32>
    %16 = math.exp %15 : vector<8x784xf32>
    %cst_12 = arith.constant 1.000000e+00 : f32
    %17 = vector.broadcast %cst_12 : f32 to vector<8x784xf32>
    %18 = arith.addf %17, %16 : vector<8x784xf32>
    %19 = tpu.reciprocal %18 {approx = true} : vector<8x784xf32> -> vector<8x784xf32>
    %cst_13 = arith.constant 1.000000e+00 : f32
    %20 = vector.broadcast %cst_13 : f32 to vector<8x784xf32>
    %21 = arith.minimumf %19, %20 : vector<8x784xf32>
    %22 = arith.truncf %21 : vector<8x784xf32> to vector<8x784xbf16>
    %c0_14 = arith.constant 0 : index
    %c0_15 = arith.constant 0 : index
    %23 = vector.load %arg6[%c0_14, %c0_15] : memref<8x784xbf16, #tpu.memory_space<vmem>>, vector<8x784xbf16>
    tpu.vector_store %arg6[%c0_14, %c0_15], %22 {strides = array<i32>} : memref<8x784xbf16, #tpu.memory_space<vmem>>, vector<8x784xbf16>,
    return
  }
  func.func @transform_0(%arg0: i32) -> (i32, i32) {
    %c0_i32 = arith.constant 0 : i32
    %c0_i32_0 = arith.constant 0 : i32
    return %arg0, %c0_i32 : i32, i32
  }
  func.func @transform_1(%arg0: i32) -> (i32, i32) {
    %c0_i32 = arith.constant 0 : i32
    %c0_i32_0 = arith.constant 0 : i32
    %c0_i32_1 = arith.constant 0 : i32
    return %c0_i32, %c0_i32_0 : i32, i32
  }
  func.func @transform_2(%arg0: i32) -> (i32, i32) {
    %c0_i32 = arith.constant 0 : i32
    %c0_i32_0 = arith.constant 0 : i32
    %c0_i32_1 = arith.constant 0 : i32
    return %c0_i32, %c0_i32_0 : i32, i32
  }
  func.func @transform_3(%arg0: i32) -> (i32, i32) {
    %c0_i32 = arith.constant 0 : i32
    %c0_i32_0 = arith.constant 0 : i32
    %c0_i32_1 = arith.constant 0 : i32
    return %c0_i32, %c0_i32_0 : i32, i32
  }
  func.func @transform_4(%arg0: i32) -> (i32, i32) {
    %c0_i32 = arith.constant 0 : i32
    %c0_i32_0 = arith.constant 0 : i32
    %c0_i32_1 = arith.constant 0 : i32
    return %c0_i32, %c0_i32_0 : i32, i32
  }
  func.func @transform_5(%arg0: i32) -> (i32, i32) {
    %c0_i32 = arith.constant 0 : i32
    %c0_i32_0 = arith.constant 0 : i32
    return %arg0, %c0_i32 : i32, i32
  }
}

</mosaic_0001>

<bundles_post_ra>
// kernel: receiver_forward.1
= control target key start
LH: loop header
LB: loop body
LE: loop exit
PB: predicated region body
PF: predicated region fallthrough
CT: control target
= control target key end

     0   :  { %v2738_v2 = vmov 0   ;;  %vm93_vm0 = vcmask 261120   ;;  %s3556_s0 = inlined_call_operand.vmem [shape: bf16[8,32], index: 0, kind: input, shape index: {}]   ;;  %s3557_s1 = inlined_call_operand.vmem [shape: bf16[32,512], index: 1, kind: input, shape index: {}]   ;;  %s3558_s2 = inlined_call_operand.vmem [shape: f32[1,512], index: 2, kind: input, shape index: {}]   ;;  %s3559_s3 = inlined_call_operand.vmem [shape: bf16[512,784], index: 3, kind: input, shape index: {}]   ;;  %s3560_s4 = inlined_call_operand.vmem [shape: f32[1,784], index: 4, kind: input, shape index: {}]   ;;  %s3561_s5 = inlined_call_operand.hbm [shape: bf16[8,784], index: 5, kind: output, shape index: {}]  }
   0x1   :  { %v2354_v0 = vld [vmem:[%s3557_s1 + $0x4] ss:$16 sps:$4 sm:$0xff]   ;;  %v2356_v1 = vld [vmem:[%s3557_s1] ss:$16 sps:$4 sm:$0xff]   ;;  %129 = vmatprep.mubr.bf16.mxu1 %v2738_v2  ;;  %v2362_v5 = vld [vmem:[%s3557_s1 + $0xc] ss:$16 sps:$4 sm:$0xff]  }
   0x2   :  { %97 = vmatprep.subr.bf16.mxu1 %v2354_v0  ;;  %v2357_v3 = vld [vmem:[%s3557_s1 + $0x24] ss:$16 sps:$4 sm:$0xff]   ;;  %v2359_v4 = vld [vmem:[%s3557_s1 + $0x20] ss:$16 sps:$4 sm:$0xff]   ;;  %v2360_v8 = vld [vmem:[%s3557_s1 + $0x8] ss:$16 sps:$4 sm:$0xff]  }
   0x3   :  { %98 = vmatpush1.bf16.msra.mxu1 %v2356_v1  ;;  %v22_v6 = vld [vmem:[%s3556_s0] sm:$0xf]  ;;  %v2365_v9 = vld [vmem:[%s3557_s1 + $0x2c] ss:$16 sps:$4 sm:$0xff]   ;;  %v2363_v12 = vld [vmem:[%s3557_s1 + $0x28] ss:$16 sps:$4 sm:$0xff]  }
   0x4   :  { %99 = vmatprep.subr.bf16.mxu1 %v2357_v3  ;;  %v2366_v7 = vld [vmem:[%s3559_s3 + $0x4] ss:$28 sps:$4 sm:$0xff]   ;;  %v2372_v11 = vld [vmem:[%s3559_s3 + $0x3c] ss:$28 sps:$4 sm:$0xff]   ;;  %v2378_v14 = vld [vmem:[%s3559_s3 + $0x74] ss:$28 sps:$4 sm:$0xff]  }
   0x5   :  { %1632 = vmatprep.subr.bf16.mxu0 %v2366_v7  ;;  %v2371_v10 = vld [vmem:[%s3559_s3] ss:$28 sps:$4 sm:$0xff]   ;;  %v2377_v13 = vld [vmem:[%s3559_s3 + $0x38] ss:$28 sps:$4 sm:$0xff]   ;;  %v2370_v15 = vld [vmem:[%s3559_s3 + $0xc] ss:$28 sps:$4 sm:$0xff]  }
   0x6   :  { %1633 = vmatpush1.bf16.msra.mxu0 %v2371_v10  ;;  %v2383_v16 = vld [vmem:[%s3559_s3 + $0x70] ss:$28 sps:$4 sm:$0xff]   ;;  %v2368_v17 = vld [vmem:[%s3559_s3 + $0x8] ss:$28 sps:$4 sm:$0xff]   ;;  %v2374_v20 = vld [vmem:[%s3559_s3 + $0x40] ss:$28 sps:$4 sm:$0xff]  }
   0x7   :  { %100 = vmatpush1.bf16.msra.mxu1 %v2359_v4  ;;  %1634 = vmatprep.subr.bf16.mxu0 %v2372_v11  ;;  %v2384_v18 = vld [vmem:[%s3559_s3 + $0xac] ss:$28 sps:$4 sm:$0xff]   ;;  %v2376_v19 = vld [vmem:[%s3559_s3 + $0x44] ss:$28 sps:$4 sm:$0xff]   ;;  %v2382_v23 = vld [vmem:[%s3559_s3 + $0x7c] ss:$28 sps:$4 sm:$0xff]  }
   0x8   :  { %138 = vmatprep.subr.bf16.mxu1 %v2362_v5  ;;  %v2389_v21 = vld [vmem:[%s3559_s3 + $0xa8] ss:$28 sps:$4 sm:$0xff]   ;;  %v2395_v24 = vld [vmem:[%s3559_s3 + $0xe0] ss:$28 sps:$4 sm:$0xff]   ;;  %v2380_v25 = vld [vmem:[%s3559_s3 + $0x78] ss:$28 sps:$4 sm:$0xff]  }
   0x9   :  { %v2390_v22 = vld [vmem:[%s3559_s3 + $0xe4] ss:$28 sps:$4 sm:$0xff]   ;;  %v2396_v26 = vld [vmem:[%s3559_s3 + $0x11c] ss:$28 sps:$4 sm:$0xff]   ;;  %v2388_v27 = vld [vmem:[%s3559_s3 + $0xb4] ss:$28 sps:$4 sm:$0xff]  }
   0xa   :  { %2056 = vmatmul.mubr.msk.bf16.vlgmr.msra.gmra.mrb[0].mxu1 %vm93_vm0, %v22_v6  ;;  %1635 = vmatpush1.bf16.msra.mxu0 %v2377_v13  ;;  %v2386_v28 = vld [vmem:[%s3559_s3 + $0xb0] ss:$28 sps:$4 sm:$0xff]   ;;  %v2401_v29 = vld [vmem:[%s3559_s3 + $0x118] ss:$28 sps:$4 sm:$0xff]   ;;  %v2392_v33 = vld [vmem:[%s3559_s3 + $0xe8] ss:$28 sps:$4 sm:$0xff]  }
   0xb   :  { %139 = vmatpush1.bf16.msra.mxu1 %v2360_v8  ;;  %170 = vmatprep.mubr.bf16.mxu1 %v2738_v2  ;;  %v2402_v30 = vld [vmem:[%s3559_s3 + $0x154] ss:$28 sps:$4 sm:$0xff]   ;;  %v2394_v31 = vld [vmem:[%s3559_s3 + $0xec] ss:$28 sps:$4 sm:$0xff]   ;;  %v2400_v35 = vld [vmem:[%s3559_s3 + $0x124] ss:$28 sps:$4 sm:$0xff]  }
   0xc   :  { %140 = vmatprep.subr.bf16.mxu1 %v2365_v9  ;;  %1636 = vmatprep.subr.bf16.mxu0 %v2378_v14  ;;  %v2407_v32 = vld [vmem:[%s3559_s3 + $0x150] ss:$28 sps:$4 sm:$0xff]   ;;  %v2398_v36 = vld [vmem:[%s3559_s3 + $0x120] ss:$28 sps:$4 sm:$0xff]   ;;  %v2413_v37 = vld [vmem:[%s3559_s3 + $0x188] ss:$28 sps:$4 sm:$0xff]  }
   0xd   :  { %v2408_v34 = vld [vmem:[%s3559_s3 + $0x18c] ss:$28 sps:$4 sm:$0xff]   ;;  %v2414_v38 = vld [vmem:[%s3559_s3 + $0x1c4] ss:$28 sps:$4 sm:$0xff]   ;;  %v2406_v39 = vld [vmem:[%s3559_s3 + $0x15c] ss:$28 sps:$4 sm:$0xff]  }
   0xe   :  { %1637 = vmatpush1.bf16.msra.mxu0 %v2383_v16  ;;  %v2419_v40 = vld [vmem:[%s3559_s3 + $0x1c0] ss:$28 sps:$4 sm:$0xff]   ;;  %v2404_v41 = vld [vmem:[%s3559_s3 + $0x158] ss:$28 sps:$4 sm:$0xff]   ;;  %v2410_v44 = vld [vmem:[%s3559_s3 + $0x190] ss:$28 sps:$4 sm:$0xff]  }
   0xf   :  { %141 = vmatpush1.bf16.msra.mxu1 %v2363_v12  ;;  %1638 = vmatprep.subr.bf16.mxu0 %v2384_v18  ;;  %v2420_v42 = vld [vmem:[%s3559_s3 + $0x1fc] ss:$28 sps:$4 sm:$0xff]   ;;  %v2412_v43 = vld [vmem:[%s3559_s3 + $0x194] ss:$28 sps:$4 sm:$0xff]   ;;  %v2418_v45 = vld [vmem:[%s3559_s3 + $0x1cc] ss:$28 sps:$4 sm:$0xff]  }
  0x10   :  { %1714 = vmatprep.subr.bf16.mxu1 %v2370_v15  ;;  %v2425_v46 = vld [vmem:[%s3559_s3 + $0x1f8] ss:$28 sps:$4 sm:$0xff]   ;;  %v2431_v48 = vld [vmem:[%s3559_s3 + $0x230] ss:$28 sps:$4 sm:$0xff]   ;;  %v2416_v49 = vld [vmem:[%s3559_s3 + $0x1c8] ss:$28 sps:$4 sm:$0xff]  }
  0x11   :  { %v2426_v47 = vld [vmem:[%s3559_s3 + $0x234] ss:$28 sps:$4 sm:$0xff]   ;;  %v2432_v50 = vld [vmem:[%s3559_s3 + $0x26c] ss:$28 sps:$4 sm:$0xff]   ;;  %v2424_v51 = vld [vmem:[%s3559_s3 + $0x204] ss:$28 sps:$4 sm:$0xff]  }
  0x12   :  { %2057 = vmatmul.mubr.msk.bf16.vlgmr.msra.gmra.mrb[4].mxu1 %vm93_vm0, %v22_v6  ;;  %1639 = vmatpush1.bf16.msra.mxu0 %v2389_v21  ;;  %v2437_v52 = vld [vmem:[%s3559_s3 + $0x268] ss:$28 sps:$4 sm:$0xff]   ;;  %v2422_v53 = vld [vmem:[%s3559_s3 + $0x200] ss:$28 sps:$4 sm:$0xff]   ;;  %v2428_v57 = vld [vmem:[%s3559_s3 + $0x238] ss:$28 sps:$4 sm:$0xff]  }
  0x13   :  { %1715 = vmatpush1.bf16.msra.mxu1 %v2368_v17  ;;  %1640 = vmatprep.subr.bf16.mxu0 %v2390_v22  ;;  %v2438_v54 = vld [vmem:[%s3559_s3 + $0x2a4] ss:$28 sps:$4 sm:$0xff]   ;;  %v2430_v55 = vld [vmem:[%s3559_s3 + $0x23c] ss:$28 sps:$4 sm:$0xff]   ;;  %v2436_v59 = vld [vmem:[%s3559_s3 + $0x274] ss:$28 sps:$4 sm:$0xff]  }
  0x14   :  { %1716 = vmatprep.subr.bf16.mxu1 %v2376_v19  ;;  %v2443_v56 = vld [vmem:[%s3559_s3 + $0x2a0] ss:$28 sps:$4 sm:$0xff]   ;;  %v2449_v60 = vld [vmem:[%s3559_s3 + $0x2d8] ss:$28 sps:$4 sm:$0xff]   ;;  %v2434_v61 = vld [vmem:[%s3559_s3 + $0x270] ss:$28 sps:$4 sm:$0xff]  }
  0x15   :  { %v2444_v58 = vld [vmem:[%s3559_s3 + $0x2dc] ss:$28 sps:$4 sm:$0xff]   ;;  %v2442_v62 = vld [vmem:[%s3559_s3 + $0x2ac] ss:$28 sps:$4 sm:$0xff]   ;;  %v2448_v0 = vld [vmem:[%s3559_s3 + $0x2e4] ss:$28 sps:$4 sm:$0xff]  }
  0x16   :  { %1641 = vmatpush1.bf16.msra.mxu0 %v2395_v24  ;;  %v2440_v63 = vld [vmem:[%s3559_s3 + $0x2a8] ss:$28 sps:$4 sm:$0xff]   ;;  %v2446_v1 = vld [vmem:[%s3559_s3 + $0x2e0] ss:$28 sps:$4 sm:$0xff]   ;;  %v2450_v2 = vld [vmem:[%s3559_s3 + $0x314] ss:$28 sps:$4 sm:$0xff]  }
  0x17   :  { %1717 = vmatpush1.bf16.msra.mxu1 %v2374_v20  ;;  %1642 = vmatprep.subr.bf16.mxu0 %v2396_v26  ;;  %v2454_v3 = vld [vmem:[%s3559_s3 + $0x31c] ss:$28 sps:$4 sm:$0xff]   ;;  %v2455_v5 = vld [vmem:[%s3559_s3 + $0x310] ss:$28 sps:$4 sm:$0xff]   ;;  %v2461_v9 = vld [vmem:[%s3559_s3 + $0x348] ss:$28 sps:$4 sm:$0xff]  }
  0x18   :  { %1718 = vmatprep.subr.bf16.mxu1 %v2382_v23  ;;  %v2452_v4 = vld [vmem:[%s3559_s3 + $0x318] ss:$28 sps:$4 sm:$0xff]   ;;  %v2456_v6 = vld [vmem:[%s3559_s3 + $0x34c] ss:$28 sps:$4 sm:$0xff]   ;;  %v2464_v10 = vld [vmem:[%s3559_s3 + $0x384] ss:$28 sps:$4 sm:$0xff]  }
  0x19   :  { %v2460_v7 = vld [vmem:[%s3559_s3 + $0x354] ss:$28 sps:$4 sm:$0xff]   ;;  %v2467_v11 = vld [vmem:[%s3559_s3 + $0x38c] ss:$28 sps:$4 sm:$0xff]  }
  0x1a   :  { %1643 = vmatpush1.bf16.msra.mxu0 %v2401_v29  ;;  %v2458_v8 = vld [vmem:[%s3559_s3 + $0x350] ss:$28 sps:$4 sm:$0xff]  }
  0x1b   :  { %1719 = vmatpush1.bf16.msra.mxu1 %v2380_v25  ;;  %1644 = vmatprep.subr.bf16.mxu0 %v2402_v30 }
  0x1c   :  { %1720 = vmatprep.subr.bf16.mxu1 %v2388_v27 }
  0x1e   :  { %1645 = vmatpush1.bf16.msra.mxu0 %v2407_v32 }
  0x1f   :  { %1721 = vmatpush1.bf16.msra.mxu1 %v2386_v28  ;;  %1646 = vmatprep.subr.bf16.mxu0 %v2408_v34 }
  0x20   :  { %1722 = vmatprep.subr.bf16.mxu1 %v2394_v31 }
  0x22   :  { %1647 = vmatpush1.bf16.msra.mxu0 %v2413_v37 }
  0x23   :  { %1723 = vmatpush1.bf16.msra.mxu1 %v2392_v33  ;;  %1648 = vmatprep.subr.bf16.mxu0 %v2414_v38 }
  0x24   :  { %1724 = vmatprep.subr.bf16.mxu1 %v2400_v35 }
  0x26   :  { %1649 = vmatpush1.bf16.msra.mxu0 %v2419_v40 }
  0x27   :  { %1725 = vmatpush1.bf16.msra.mxu1 %v2398_v36  ;;  %1650 = vmatprep.subr.bf16.mxu0 %v2420_v42 }
  0x28   :  { %1726 = vmatprep.subr.bf16.mxu1 %v2406_v39 }
  0x2a   :  { %1651 = vmatpush1.bf16.msra.mxu0 %v2425_v46 }
  0x2b   :  { %1727 = vmatpush1.bf16.msra.mxu1 %v2404_v41  ;;  %1652 = vmatprep.subr.bf16.mxu0 %v2426_v47 }
  0x2c   :  { %1728 = vmatprep.subr.bf16.mxu1 %v2412_v43 }
  0x2e   :  { %1653 = vmatpush1.bf16.msra.mxu0 %v2431_v48 }
  0x2f   :  { %1729 = vmatpush1.bf16.msra.mxu1 %v2410_v44  ;;  %1654 = vmatprep.subr.bf16.mxu0 %v2432_v50 }
  0x30   :  { %1730 = vmatprep.subr.bf16.mxu1 %v2418_v45 }
  0x32   :  { %1655 = vmatpush1.bf16.msra.mxu0 %v2437_v52 }
  0x33   :  { %1731 = vmatpush1.bf16.msra.mxu1 %v2416_v49  ;;  %1656 = vmatprep.subr.bf16.mxu0 %v2438_v54 }
  0x34   :  { %1732 = vmatprep.subr.bf16.mxu1 %v2424_v51 }
  0x36   :  { %1657 = vmatpush1.bf16.msra.mxu0 %v2443_v56 }
  0x37   :  { %1733 = vmatpush1.bf16.msra.mxu1 %v2422_v53  ;;  %1658 = vmatprep.subr.bf16.mxu0 %v2444_v58 }
  0x38   :  { %1734 = vmatprep.subr.bf16.mxu1 %v2430_v55 }
  0x3a   :  { %1659 = vmatpush1.bf16.msra.mxu0 %v2449_v60 }
  0x3b   :  { %1735 = vmatpush1.bf16.msra.mxu1 %v2428_v57  ;;  %1660 = vmatprep.subr.bf16.mxu0 %v2450_v2 }
  0x3c   :  { %1736 = vmatprep.subr.bf16.mxu1 %v2436_v59 }
  0x3e   :  { %1661 = vmatpush1.bf16.msra.mxu0 %v2455_v5 }
  0x3f   :  { %1737 = vmatpush1.bf16.msra.mxu1 %v2434_v61  ;;  %1662 = vmatprep.subr.bf16.mxu0 %v2456_v6 }
  0x40   :  { %1738 = vmatprep.subr.bf16.mxu1 %v2442_v62 }
  0x42   :  { %1663 = vmatpush1.bf16.msra.mxu0 %v2461_v9 }
  0x43   :  { %1739 = vmatpush1.bf16.msra.mxu1 %v2440_v63  ;;  %1673 = vmatprep.subr.bf16.mxu0 %v2464_v10 }
  0x44   :  { %1740 = vmatprep.subr.bf16.mxu1 %v2448_v0 }
  0x47   :  { %1741 = vmatpush1.bf16.msra.mxu1 %v2446_v1 }
  0x48   :  { %1742 = vmatprep.subr.bf16.mxu1 %v2454_v3 }
  0x4b   :  { %1743 = vmatpush1.bf16.msra.mxu1 %v2452_v4 }
  0x4c   :  { %1744 = vmatprep.subr.bf16.mxu1 %v2460_v7 }
  0x4f   :  { %1745 = vmatpush1.bf16.msra.mxu1 %v2458_v8 }
  0x50   :  { %1755 = vmatprep.subr.bf16.mxu1 %v2467_v11 }
  0x51   :  { %10 = vsyncpa [#allocation3], 0  ;;  %v33_v12 = vlaneseq  ;;  %v3003_v15 = vld [vmem:[%s3558_s2] sm:$0xf]  ;;  %v2465_v30 = vld [vmem:[%s3559_s3 + $0x388] ss:$28 sps:$4 sm:$0xff]  }
  0x52   :  { %v2462_v29 = vld [vmem:[%s3559_s3 + $0x380] ss:$28 sps:$4 sm:$0xff]   ;;  %v2468_v37 = vld [vmem:[%s3559_s3 + $0x3b8] ss:$28 sps:$4 sm:$0xff]   ;;  %v2474_v45 = vld [vmem:[%s3559_s3 + $0x3f0] ss:$28 sps:$4 sm:$0xff]  }
  0x53   :  { %v2997_v13 = vshrl.u32 %v33_v12, 7  ;;  %v2470_v33 = vld [vmem:[%s3559_s3 + $0x3bc] ss:$28 sps:$4 sm:$0xff]   ;;  %v2473_v34 = vld [vmem:[%s3559_s3 + $0x3c4] ss:$28 sps:$4 sm:$0xff]   ;;  %vm2032_vm1 = vcmask 125952  }
  0x54   :  { %v2471_v38 = vld [vmem:[%s3559_s3 + $0x3c0] ss:$28 sps:$4 sm:$0xff]   ;;  %v2476_v41 = vld [vmem:[%s3559_s3 + $0x3f4] ss:$28 sps:$4 sm:$0xff]   ;;  %v2482_v48 = vld [vmem:[%s3559_s3 + $0x42c] ss:$28 sps:$4 sm:$0xff]  }
  0x55   :  { %v35_v14 = vsub.s32 0, %v2997_v13  ;;  %v39_v16 = vsub.s32 1, %v2997_v13  ;;  %v47_v24 = vsub.s32 3, %v2997_v13  ;;  %v2479_v42 = vld [vmem:[%s3559_s3 + $0x3fc] ss:$28 sps:$4 sm:$0xff]  }
  0x56   :  { %v2477_v46 = vld [vmem:[%s3559_s3 + $0x3f8] ss:$28 sps:$4 sm:$0xff]   ;;  %v2480_v50 = vld [vmem:[%s3559_s3 + $0x428] ss:$28 sps:$4 sm:$0xff]   ;;  %v2483_v51 = vld [vmem:[%s3559_s3 + $0x430] ss:$28 sps:$4 sm:$0xff]  }
  0x57   :  { %v36_v17 = vrot.slane %v3003_v15, %v35_v14  ;;  %v40_v18 = vrot.slane %v3003_v15, %v39_v16  ;;  %v48_v31 = vrot.slane %v3003_v15, %v47_v24  ;;  %v2485_v49 = vld [vmem:[%s3559_s3 + $0x434] ss:$28 sps:$4 sm:$0xff]   ;;  %v2488_v52 = vld [vmem:[%s3559_s3 + $0x464] ss:$28 sps:$4 sm:$0xff]   ;;  %v2491_v53 = vld [vmem:[%s3559_s3 + $0x46c] ss:$28 sps:$4 sm:$0xff]  }
  0x58   :  { %v2486_v54 = vld [vmem:[%s3559_s3 + $0x460] ss:$28 sps:$4 sm:$0xff]   ;;  %v2489_v55 = vld [vmem:[%s3559_s3 + $0x468] ss:$28 sps:$4 sm:$0xff]   ;;  %v2492_v58 = vld [vmem:[%s3559_s3 + $0x498] ss:$28 sps:$4 sm:$0xff]  }
  0x59   :  { %v2494_v56 = vld [vmem:[%s3559_s3 + $0x49c] ss:$28 sps:$4 sm:$0xff]   ;;  %v2497_v57 = vld [vmem:[%s3559_s3 + $0x4a4] ss:$28 sps:$4 sm:$0xff]   ;;  %v2500_v60 = vld [vmem:[%s3559_s3 + $0x4d4] ss:$28 sps:$4 sm:$0xff]  }
  0x5a   :  { %v2495_v59 = vld [vmem:[%s3559_s3 + $0x4a0] ss:$28 sps:$4 sm:$0xff]   ;;  %v2498_v62 = vld [vmem:[%s3559_s3 + $0x4d0] ss:$28 sps:$4 sm:$0xff]   ;;  %v2501_v63 = vld [vmem:[%s3559_s3 + $0x4d8] ss:$28 sps:$4 sm:$0xff]  }
  0x5b   :  { %v2503_v61 = vld [vmem:[%s3559_s3 + $0x4dc] ss:$28 sps:$4 sm:$0xff]   ;;  %v2506_v0 = vld [vmem:[%s3559_s3 + $0x50c] ss:$28 sps:$4 sm:$0xff]   ;;  %v2509_v1 = vld [vmem:[%s3559_s3 + $0x514] ss:$28 sps:$4 sm:$0xff]  }
  0x5c   :  { %v2504_v2 = vld [vmem:[%s3559_s3 + $0x508] ss:$28 sps:$4 sm:$0xff]   ;;  %v2507_v3 = vld [vmem:[%s3559_s3 + $0x510] ss:$28 sps:$4 sm:$0xff]   ;;  %v2510_v6 = vld [vmem:[%s3559_s3 + $0x540] ss:$28 sps:$4 sm:$0xff]  }
  0x5d   :  { %v2512_v4 = vld [vmem:[%s3559_s3 + $0x544] ss:$28 sps:$4 sm:$0xff]   ;;  %v2515_v5 = vld [vmem:[%s3559_s3 + $0x54c] ss:$28 sps:$4 sm:$0xff]   ;;  %v2518_v8 = vld [vmem:[%s3559_s3 + $0x57c] ss:$28 sps:$4 sm:$0xff]  }
  0x5e   :  { %v2513_v7 = vld [vmem:[%s3559_s3 + $0x548] ss:$28 sps:$4 sm:$0xff]   ;;  %v2516_v10 = vld [vmem:[%s3559_s3 + $0x578] ss:$28 sps:$4 sm:$0xff]   ;;  %v2519_v11 = vld [vmem:[%s3559_s3 + $0x580] ss:$28 sps:$4 sm:$0xff]  }
  0x5f   :  { %v2521_v9 = vld [vmem:[%s3559_s3 + $0x584] ss:$28 sps:$4 sm:$0xff]   ;;  %v2524_v12 = vld [vmem:[%s3559_s3 + $0x5b4] ss:$28 sps:$4 sm:$0xff]  }
  0xdd   :  { %v131_v19 = vpop.f32.mrb[0].mxu1 }
  0xde   :  { %v132_v20 = vadd.f32 %v131_v19, %v36_v17  ;;  %v133_v21 = vpop.f32.mrb[1].mxu1  ;;  %v2527_v17 = vld [vmem:[%s3559_s3 + $0x5bc] ss:$28 sps:$4 sm:$0xff]  }
  0xdf   :  { %v134_v22 = vadd.f32 %v133_v21, %v40_v18  ;;  %v135_v23 = vpop.f32.mrb[2].mxu1  ;;  %v2522_v18 = vld [vmem:[%s3559_s3 + $0x5b0] ss:$28 sps:$4 sm:$0xff]   ;;  %v2525_v19 = vld [vmem:[%s3559_s3 + $0x5b8] ss:$28 sps:$4 sm:$0xff]  }
  0xe0   :  { %v179_v25 = vmax.f32 %v132_v20, 0.0  ;;  %v136_v26 = vpop.f32.mrb[3].mxu1  ;;  %v2530_v20 = vld [vmem:[%s3559_s3 + $0x5ec] ss:$28 sps:$4 sm:$0xff]   ;;  %v2533_v21 = vld [vmem:[%s3559_s3 + $0x5f4] ss:$28 sps:$4 sm:$0xff]  }
  0xe1   :  { %v180_v27 = vmax.f32 %v134_v22, 0.0  ;;  %v2528_v22 = vld [vmem:[%s3559_s3 + $0x5e8] ss:$28 sps:$4 sm:$0xff]   ;;  %v2531_v23 = vld [vmem:[%s3559_s3 + $0x5f0] ss:$28 sps:$4 sm:$0xff]  }
  0xe2   :  { %v3024_v32 = vpack.c.bf16 %v179_v25, %v179_v25  ;;  %v2536_v25 = vld [vmem:[%s3559_s3 + $0x624] ss:$28 sps:$4 sm:$0xff]   ;;  %v2539_v26 = vld [vmem:[%s3559_s3 + $0x62c] ss:$28 sps:$4 sm:$0xff]  }
  0xe3   :  { %v3013_v28 = vpack.c.bf16 %v180_v27, %v180_v27  ;;  %v43_v27 = vsub.s32 2, %v2997_v13 }
  0xe5   :  { %1664 = vmatprep.mubr.bf16.mxu0 %v3013_v28  ;;  %1746 = vmatprep.mubr.bf16.mxu1 %v3013_v28  ;;  %v3034_v35 = vpop.f32.mrb[4].mxu1 }
  0xe6   :  { %1665 = vmatmul.mubr.bf16.vlgmr.msra.gmra.mrb[0].mxu0 %v3024_v32  ;;  %1747 = vmatmul.mubr.bf16.vlgmr.msra.gmra.mrb[8].mxu1 %v3024_v32  ;;  %v174_v36 = vpop.f32.mrb[5].mxu1 }
  0xe7   :  { %1674 = vmatpush1.bf16.msra.mxu0 %v2462_v29  ;;  %1756 = vmatpush1.bf16.msra.mxu1 %v2465_v30  ;;  %v175_v39 = vadd.f32 %v174_v36, %v48_v31  ;;  %v176_v40 = vpop.f32.mrb[6].mxu1  ;;  %v2534_v29 = vld [vmem:[%s3559_s3 + $0x620] ss:$28 sps:$4 sm:$0xff]   ;;  %v2537_v30 = vld [vmem:[%s3559_s3 + $0x628] ss:$28 sps:$4 sm:$0xff]  }
  0xe8   :  { %1675 = vmatprep.subr.bf16.mxu0 %v2470_v33  ;;  %1757 = vmatprep.subr.bf16.mxu1 %v2473_v34  ;;  %v177_v43 = vpop.f32.mrb[7].mxu1  ;;  %v2542_v31 = vld [vmem:[%s3559_s3 + $0x65c] ss:$28 sps:$4 sm:$0xff]   ;;  %v2545_v33 = vld [vmem:[%s3559_s3 + $0x664] ss:$28 sps:$4 sm:$0xff]   ;;  %v44_v34 = vrot.slane %v3003_v15, %v43_v27 }
  0xe9   :  { %v182_v44 = vmax.f32 %v175_v39, 0.0  ;;  %v2540_v36 = vld [vmem:[%s3559_s3 + $0x658] ss:$28 sps:$4 sm:$0xff]   ;;  %v2546_v40 = vld [vmem:[%s3559_s3 + $0x690] ss:$28 sps:$4 sm:$0xff]  }
  0xea   :  { %v2551_v15 = vld [vmem:[%s3559_s3 + $0x69c] ss:$28 sps:$4 sm:$0xff]   ;;  %v173_v39 = vadd.f32 %v3034_v35, %v44_v34  ;;  %v2557_v35 = vld [vmem:[%s3559_s3 + $0x6d4] ss:$28 sps:$4 sm:$0xff]   ;;  %v2612_v34 = vld [vmem:[%s3559_s3 + $0x408] ss:$28 sps:$4 sm:$0xff]  }
  0xeb   :  { %1676 = vmatpush1.bf16.msra.mxu0 %v2468_v37  ;;  %1758 = vmatpush1.bf16.msra.mxu1 %v2471_v38  ;;  %v3056_v47 = vpack.c.bf16 %v182_v44, %v182_v44  ;;  %v2543_v37 = vld [vmem:[%s3559_s3 + $0x660] ss:$28 sps:$4 sm:$0xff]   ;;  %v2548_v38 = vld [vmem:[%s3559_s3 + $0x694] ss:$28 sps:$4 sm:$0xff]   ;;  %v2552_v44 = vld [vmem:[%s3559_s3 + $0x6c8] ss:$28 sps:$4 sm:$0xff]  }
  0xec   :  { %1677 = vmatprep.subr.bf16.mxu0 %v2476_v41  ;;  %1759 = vmatprep.subr.bf16.mxu1 %v2479_v42  ;;  %v2549_v41 = vld [vmem:[%s3559_s3 + $0x698] ss:$28 sps:$4 sm:$0xff]   ;;  %v2554_v42 = vld [vmem:[%s3559_s3 + $0x6cc] ss:$28 sps:$4 sm:$0xff]   ;;  %v181_v43 = vmax.f32 %v173_v39, 0.0 }
  0xed   :  { %1705 = vmatprep.mubr.bf16.mxu0 %v3056_v47  ;;  %1787 = vmatprep.mubr.bf16.mxu1 %v3056_v47  ;;  %v2620_v39 = vld [vmem:[%s3559_s3 + $0x2b4] ss:$28 sps:$4 sm:$0xff]  }
  0xef   :  { %1678 = vmatpush1.bf16.msra.mxu0 %v2474_v45  ;;  %1760 = vmatpush1.bf16.msra.mxu1 %v2477_v46  ;;  %v2555_v45 = vld [vmem:[%s3559_s3 + $0x6d0] ss:$28 sps:$4 sm:$0xff]  }
  0xf0   :  { %1679 = vmatprep.subr.bf16.mxu0 %v2482_v48  ;;  %1761 = vmatprep.subr.bf16.mxu1 %v2485_v49  ;;  %v2560_v46 = vld [vmem:[%s3559_s3 + $0x14] ss:$28 sps:$4 sm:$0xff]   ;;  %v3227_v49 = vpack.c.bf16 %v181_v43, %v181_v43 }
  0xf1   :  { %v2561_v48 = vld [vmem:[%s3559_s3 + $0x1d8] ss:$28 sps:$4 sm:$0xff]   ;;  %v2626_v43 = vld [vmem:[%s3559_s3 + $0x670] ss:$28 sps:$4 sm:$0xff]  }
  0xf3   :  { %1680 = vmatpush1.bf16.msra.mxu0 %v2480_v50  ;;  %1762 = vmatpush1.bf16.msra.mxu1 %v2483_v51  ;;  %v2558_v50 = vld [vmem:[%s3559_s3 + $0x10] ss:$28 sps:$4 sm:$0xff]   ;;  %v2562_v51 = vld [vmem:[%s3559_s3 + $0x18] ss:$28 sps:$4 sm:$0xff]  }
  0xf4   :  { %1681 = vmatprep.subr.bf16.mxu0 %v2488_v52  ;;  %1763 = vmatprep.subr.bf16.mxu1 %v2491_v53  ;;  %v2565_v52 = vld [vmem:[%s3559_s3 + $0x4c] ss:$28 sps:$4 sm:$0xff]  }
  0xf5   :  { %v2566_v53 = vld [vmem:[%s3559_s3 + $0x210] ss:$28 sps:$4 sm:$0xff]  }
  0xf7   :  { %1682 = vmatpush1.bf16.msra.mxu0 %v2486_v54  ;;  %1764 = vmatpush1.bf16.msra.mxu1 %v2489_v55  ;;  %v2563_v54 = vld [vmem:[%s3559_s3 + $0x48] ss:$28 sps:$4 sm:$0xff]   ;;  %v2567_v55 = vld [vmem:[%s3559_s3 + $0x50] ss:$28 sps:$4 sm:$0xff]  }
  0xf8   :  { %1683 = vmatprep.subr.bf16.mxu0 %v2494_v56  ;;  %1765 = vmatprep.subr.bf16.mxu1 %v2497_v57  ;;  %v2570_v56 = vld [vmem:[%s3559_s3 + $0x84] ss:$28 sps:$4 sm:$0xff]  }
  0xf9   :  { %v2571_v57 = vld [vmem:[%s3559_s3 + $0x248] ss:$28 sps:$4 sm:$0xff]  }
  0xfb   :  { %1684 = vmatpush1.bf16.msra.mxu0 %v2492_v58  ;;  %1766 = vmatpush1.bf16.msra.mxu1 %v2495_v59  ;;  %v2568_v58 = vld [vmem:[%s3559_s3 + $0x80] ss:$28 sps:$4 sm:$0xff]  }
  0xfc   :  { %1685 = vmatprep.subr.bf16.mxu0 %v2500_v60  ;;  %1767 = vmatprep.subr.bf16.mxu1 %v2503_v61  ;;  %v2575_v59 = vld [vmem:[%s3559_s3 + $0xbc] ss:$28 sps:$4 sm:$0xff]  }
  0xfd   :  { %v2576_v60 = vld [vmem:[%s3559_s3 + $0x280] ss:$28 sps:$4 sm:$0xff]   ;;  %v2573_v61 = vld [vmem:[%s3559_s3 + $0xb8] ss:$28 sps:$4 sm:$0xff]  }
  0xff   :  { %1686 = vmatpush1.bf16.msra.mxu0 %v2498_v62  ;;  %1768 = vmatpush1.bf16.msra.mxu1 %v2501_v63  ;;  %v2577_v62 = vld [vmem:[%s3559_s3 + $0xc0] ss:$28 sps:$4 sm:$0xff]   ;;  %v2580_v63 = vld [vmem:[%s3559_s3 + $0xf4] ss:$28 sps:$4 sm:$0xff]  }
 0x100   :  { %1687 = vmatprep.subr.bf16.mxu0 %v2506_v0  ;;  %1769 = vmatprep.subr.bf16.mxu1 %v2509_v1  ;;  %v2581_v0 = vld [vmem:[%s3559_s3 + $0x2b8] ss:$28 sps:$4 sm:$0xff]   ;;  %v2578_v1 = vld [vmem:[%s3559_s3 + $0xf0] ss:$28 sps:$4 sm:$0xff]  }
 0x103   :  { %1688 = vmatpush1.bf16.msra.mxu0 %v2504_v2  ;;  %1770 = vmatpush1.bf16.msra.mxu1 %v2507_v3  ;;  %v2582_v2 = vld [vmem:[%s3559_s3 + $0xf8] ss:$28 sps:$4 sm:$0xff]   ;;  %v2585_v3 = vld [vmem:[%s3559_s3 + $0x12c] ss:$28 sps:$4 sm:$0xff]  }
 0x104   :  { %1689 = vmatprep.subr.bf16.mxu0 %v2512_v4  ;;  %1771 = vmatprep.subr.bf16.mxu1 %v2515_v5  ;;  %v2586_v4 = vld [vmem:[%s3559_s3 + $0x2f0] ss:$28 sps:$4 sm:$0xff]   ;;  %v2583_v5 = vld [vmem:[%s3559_s3 + $0x128] ss:$28 sps:$4 sm:$0xff]  }
 0x107   :  { %1690 = vmatpush1.bf16.msra.mxu0 %v2510_v6  ;;  %1772 = vmatpush1.bf16.msra.mxu1 %v2513_v7  ;;  %v2587_v6 = vld [vmem:[%s3559_s3 + $0x130] ss:$28 sps:$4 sm:$0xff]   ;;  %v2590_v7 = vld [vmem:[%s3559_s3 + $0x164] ss:$28 sps:$4 sm:$0xff]  }
 0x108   :  { %1691 = vmatprep.subr.bf16.mxu0 %v2518_v8  ;;  %1773 = vmatprep.subr.bf16.mxu1 %v2521_v9  ;;  %v2591_v8 = vld [vmem:[%s3559_s3 + $0x328] ss:$28 sps:$4 sm:$0xff]   ;;  %v2588_v9 = vld [vmem:[%s3559_s3 + $0x160] ss:$28 sps:$4 sm:$0xff]  }
 0x10b   :  { %1692 = vmatpush1.bf16.msra.mxu0 %v2516_v10  ;;  %1774 = vmatpush1.bf16.msra.mxu1 %v2519_v11  ;;  %v2592_v10 = vld [vmem:[%s3559_s3 + $0x168] ss:$28 sps:$4 sm:$0xff]   ;;  %v2595_v11 = vld [vmem:[%s3559_s3 + $0x19c] ss:$28 sps:$4 sm:$0xff]  }
 0x10c   :  { %1693 = vmatprep.subr.bf16.mxu0 %v2524_v12  ;;  %1775 = vmatprep.subr.bf16.mxu1 %v2527_v17  ;;  %v2596_v12 = vld [vmem:[%s3559_s3 + $0x360] ss:$28 sps:$4 sm:$0xff]   ;;  %v2593_v17 = vld [vmem:[%s3559_s3 + $0x198] ss:$28 sps:$4 sm:$0xff]  }
 0x10f   :  { %1694 = vmatpush1.bf16.msra.mxu0 %v2522_v18  ;;  %1776 = vmatpush1.bf16.msra.mxu1 %v2525_v19  ;;  %v2597_v18 = vld [vmem:[%s3559_s3 + $0x1a0] ss:$28 sps:$4 sm:$0xff]   ;;  %v2600_v19 = vld [vmem:[%s3559_s3 + $0x1d4] ss:$28 sps:$4 sm:$0xff]  }
 0x110   :  { %1695 = vmatprep.subr.bf16.mxu0 %v2530_v20  ;;  %1777 = vmatprep.subr.bf16.mxu1 %v2533_v21  ;;  %v2601_v20 = vld [vmem:[%s3559_s3 + $0x558] ss:$28 sps:$4 sm:$0xff]   ;;  %v2598_v21 = vld [vmem:[%s3559_s3 + $0x1d0] ss:$28 sps:$4 sm:$0xff]  }
 0x113   :  { %1696 = vmatpush1.bf16.msra.mxu0 %v2528_v22  ;;  %1778 = vmatpush1.bf16.msra.mxu1 %v2531_v23  ;;  %v2602_v22 = vld [vmem:[%s3559_s3 + $0x398] ss:$28 sps:$4 sm:$0xff]   ;;  %v2605_v23 = vld [vmem:[%s3559_s3 + $0x20c] ss:$28 sps:$4 sm:$0xff]  }
 0x114   :  { %1697 = vmatprep.subr.bf16.mxu0 %v2536_v25  ;;  %1779 = vmatprep.subr.bf16.mxu1 %v2539_v26  ;;  %v2606_v25 = vld [vmem:[%s3559_s3 + $0x590] ss:$28 sps:$4 sm:$0xff]   ;;  %v2603_v26 = vld [vmem:[%s3559_s3 + $0x208] ss:$28 sps:$4 sm:$0xff]  }
 0x117   :  { %1698 = vmatpush1.bf16.msra.mxu0 %v2534_v29  ;;  %1780 = vmatpush1.bf16.msra.mxu1 %v2537_v30  ;;  %v2607_v29 = vld [vmem:[%s3559_s3 + $0x3d0] ss:$28 sps:$4 sm:$0xff]   ;;  %v2610_v30 = vld [vmem:[%s3559_s3 + $0x244] ss:$28 sps:$4 sm:$0xff]  }
 0x118   :  { %1699 = vmatprep.subr.bf16.mxu0 %v2542_v31  ;;  %1781 = vmatprep.subr.bf16.mxu1 %v2545_v33  ;;  %v2611_v31 = vld [vmem:[%s3559_s3 + $0x5c8] ss:$28 sps:$4 sm:$0xff]   ;;  %v2608_v33 = vld [vmem:[%s3559_s3 + $0x240] ss:$28 sps:$4 sm:$0xff]  }
 0x11b   :  { %1700 = vmatpush1.bf16.msra.mxu0 %v2540_v36  ;;  %1782 = vmatpush1.bf16.msra.mxu1 %v2543_v37  ;;  %v2615_v36 = vld [vmem:[%s3559_s3 + $0x27c] ss:$28 sps:$4 sm:$0xff]  }
 0x11c   :  { %1701 = vmatprep.subr.bf16.mxu0 %v2548_v38  ;;  %1783 = vmatprep.subr.bf16.mxu1 %v2551_v15  ;;  %v2616_v37 = vld [vmem:[%s3559_s3 + $0x600] ss:$28 sps:$4 sm:$0xff]   ;;  %v2613_v38 = vld [vmem:[%s3559_s3 + $0x278] ss:$28 sps:$4 sm:$0xff]  }
 0x11d   :  { %v2617_v15 = vld [vmem:[%s3559_s3 + $0x440] ss:$28 sps:$4 sm:$0xff]  }
 0x11f   :  { %1702 = vmatpush1.bf16.msra.mxu0 %v2546_v40  ;;  %1784 = vmatpush1.bf16.msra.mxu1 %v2549_v41  ;;  %v2621_v40 = vld [vmem:[%s3559_s3 + $0x638] ss:$28 sps:$4 sm:$0xff]   ;;  %v2618_v41 = vld [vmem:[%s3559_s3 + $0x2b0] ss:$28 sps:$4 sm:$0xff]  }
 0x120   :  { %1703 = vmatprep.subr.bf16.mxu0 %v2554_v42  ;;  %1785 = vmatprep.subr.bf16.mxu1 %v2557_v35  ;;  %v2622_v42 = vld [vmem:[%s3559_s3 + $0x478] ss:$28 sps:$4 sm:$0xff]   ;;  %v2625_v35 = vld [vmem:[%s3559_s3 + $0x2ec] ss:$28 sps:$4 sm:$0xff]  }
 0x123   :  { %1704 = vmatpush1.bf16.msra.mxu0 %v2552_v44  ;;  %1786 = vmatpush1.bf16.msra.mxu1 %v2555_v45  ;;  %v2623_v44 = vld [vmem:[%s3559_s3 + $0x2e8] ss:$28 sps:$4 sm:$0xff]   ;;  %v2627_v45 = vld [vmem:[%s3559_s3 + $0x4b0] ss:$28 sps:$4 sm:$0xff]  }
 0x124   :  { %1796 = vmatprep.subr.bf16.mxu0 %v2560_v46  ;;  %2290 = vmatprep.subr.bf16.mxu1 %v2561_v48  ;;  %v2630_v46 = vld [vmem:[%s3559_s3 + $0x324] ss:$28 sps:$4 sm:$0xff]  }
 0x125   :  { %v2631_v48 = vld [vmem:[%s3559_s3 + $0x6a8] ss:$28 sps:$4 sm:$0xff]  }
 0x126   :  { %1706 = vmatmul.mubr.bf16.vlgmr.msra.gmra.mrb[0].mxu0 %v3227_v49  ;;  %1788 = vmatmul.mubr.bf16.vlgmr.msra.gmra.mrb[8].mxu1 %v3227_v49 }
 0x127   :  { %1797 = vmatpush1.bf16.msra.mxu0 %v2558_v50  ;;  %1828 = vmatprep.mubr.bf16.mxu0 %v3013_v28  ;;  %v2628_v50 = vld [vmem:[%s3559_s3 + $0x320] ss:$28 sps:$4 sm:$0xff]  }
 0x128   :  { %2291 = vmatpush3.bf16.msra.mxu1 %v2562_v51  ;;  %1910 = vmatprep.mubr.bf16.mxu1 %v3013_v28  ;;  %v2572_v28 = vld [vmem:[%s3559_s3 + $0x88] ss:$28 sps:$4 sm:$0xff]  }
 0x129   :  { %1798 = vmatprep.subr.bf16.mxu0 %v2565_v52  ;;  %2292 = vmatprep.subr.bf16.mxu1 %v2566_v53  ;;  %v2632_v51 = vld [vmem:[%s3559_s3 + $0x4e8] ss:$28 sps:$4 sm:$0xff]   ;;  %v2635_v52 = vld [vmem:[%s3559_s3 + $0x35c] ss:$28 sps:$4 sm:$0xff]  }
 0x12a   :  { %v2636_v53 = vld [vmem:[%s3559_s3 + $0x6e0] ss:$28 sps:$4 sm:$0xff]  }
 0x12b   :  { %1799 = vmatpush1.bf16.msra.mxu0 %v2563_v54  ;;  %v2633_v54 = vld [vmem:[%s3559_s3 + $0x358] ss:$28 sps:$4 sm:$0xff]  }
 0x12c   :  { %2293 = vmatpush3.bf16.msra.mxu1 %v2567_v55  ;;  %1800 = vmatprep.subr.bf16.mxu0 %v2570_v56  ;;  %v2637_v55 = vld [vmem:[%s3559_s3 + $0x520] ss:$28 sps:$4 sm:$0xff]   ;;  %v2640_v56 = vld [vmem:[%s3559_s3 + $0x394] ss:$28 sps:$4 sm:$0xff]  }
 0x12d   :  { %2294 = vmatprep.subr.bf16.mxu1 %v2571_v57  ;;  %v2638_v57 = vld [vmem:[%s3559_s3 + $0x390] ss:$28 sps:$4 sm:$0xff]  }
 0x12f   :  { %1801 = vmatpush1.bf16.msra.mxu0 %v2568_v58  ;;  %v2643_v58 = vld [vmem:[%s3559_s3 + $0x3cc] ss:$28 sps:$4 sm:$0xff]  }
 0x130   :  { %2295 = vmatpush3.bf16.msra.mxu1 %v2572_v28  ;;  %1802 = vmatprep.subr.bf16.mxu0 %v2575_v59  ;;  %v2641_v28 = vld [vmem:[%s3559_s3 + $0x3c8] ss:$28 sps:$4 sm:$0xff]  }
 0x131   :  { %2296 = vmatprep.subr.bf16.mxu1 %v2576_v60  ;;  %v2646_v59 = vld [vmem:[%s3559_s3 + $0x404] ss:$28 sps:$4 sm:$0xff]  }
 0x132   :  { %v2644_v60 = vld [vmem:[%s3559_s3 + $0x400] ss:$28 sps:$4 sm:$0xff]  }
 0x133   :  { %1803 = vmatpush1.bf16.msra.mxu0 %v2573_v61  ;;  %v2652_v61 = vld [vmem:[%s3559_s3 + $0x474] ss:$28 sps:$4 sm:$0xff]  }
 0x134   :  { %2297 = vmatpush3.bf16.msra.mxu1 %v2577_v62  ;;  %1804 = vmatprep.subr.bf16.mxu0 %v2580_v63  ;;  %v2650_v62 = vld [vmem:[%s3559_s3 + $0x470] ss:$28 sps:$4 sm:$0xff]  }
 0x135   :  { %2298 = vmatprep.subr.bf16.mxu1 %v2581_v0  ;;  %v2655_v63 = vld [vmem:[%s3559_s3 + $0x4ac] ss:$28 sps:$4 sm:$0xff]  }
 0x136   :  { %v2653_v0 = vld [vmem:[%s3559_s3 + $0x4a8] ss:$28 sps:$4 sm:$0xff]  }
 0x137   :  { %1805 = vmatpush1.bf16.msra.mxu0 %v2578_v1  ;;  %v2658_v1 = vld [vmem:[%s3559_s3 + $0x4e4] ss:$28 sps:$4 sm:$0xff]  }
 0x138   :  { %2299 = vmatpush3.bf16.msra.mxu1 %v2582_v2  ;;  %1806 = vmatprep.subr.bf16.mxu0 %v2585_v3  ;;  %v2656_v2 = vld [vmem:[%s3559_s3 + $0x4e0] ss:$28 sps:$4 sm:$0xff]  }
 0x139   :  { %2300 = vmatprep.subr.bf16.mxu1 %v2586_v4  ;;  %v2661_v3 = vld [vmem:[%s3559_s3 + $0x51c] ss:$28 sps:$4 sm:$0xff]  }
 0x13a   :  { %v2659_v4 = vld [vmem:[%s3559_s3 + $0x518] ss:$28 sps:$4 sm:$0xff]  }
 0x13b   :  { %1807 = vmatpush1.bf16.msra.mxu0 %v2583_v5  ;;  %v2664_v5 = vld [vmem:[%s3559_s3 + $0x554] ss:$28 sps:$4 sm:$0xff]  }
 0x13c   :  { %2301 = vmatpush3.bf16.msra.mxu1 %v2587_v6  ;;  %1808 = vmatprep.subr.bf16.mxu0 %v2590_v7  ;;  %v2662_v6 = vld [vmem:[%s3559_s3 + $0x550] ss:$28 sps:$4 sm:$0xff]  }
 0x13d   :  { %2302 = vmatprep.subr.bf16.mxu1 %v2591_v8  ;;  %v2667_v7 = vld [vmem:[%s3559_s3 + $0x58c] ss:$28 sps:$4 sm:$0xff]  }
 0x13e   :  { %v2665_v8 = vld [vmem:[%s3559_s3 + $0x588] ss:$28 sps:$4 sm:$0xff]  }
 0x13f   :  { %1809 = vmatpush1.bf16.msra.mxu0 %v2588_v9  ;;  %v2670_v9 = vld [vmem:[%s3559_s3 + $0x5c4] ss:$28 sps:$4 sm:$0xff]  }
 0x140   :  { %2303 = vmatpush3.bf16.msra.mxu1 %v2592_v10  ;;  %1810 = vmatprep.subr.bf16.mxu0 %v2595_v11  ;;  %v2668_v10 = vld [vmem:[%s3559_s3 + $0x5c0] ss:$28 sps:$4 sm:$0xff]  }
 0x141   :  { %2304 = vmatprep.subr.bf16.mxu1 %v2596_v12  ;;  %v2673_v11 = vld [vmem:[%s3559_s3 + $0x5fc] ss:$28 sps:$4 sm:$0xff]  }
 0x142   :  { %v2671_v12 = vld [vmem:[%s3559_s3 + $0x5f8] ss:$28 sps:$4 sm:$0xff]  }
 0x143   :  { %1811 = vmatpush1.bf16.msra.mxu0 %v2593_v17  ;;  %v2676_v17 = vld [vmem:[%s3559_s3 + $0x634] ss:$28 sps:$4 sm:$0xff]  }
 0x144   :  { %2305 = vmatpush3.bf16.msra.mxu1 %v2597_v18  ;;  %1812 = vmatprep.subr.bf16.mxu0 %v2600_v19  ;;  %v2674_v18 = vld [vmem:[%s3559_s3 + $0x630] ss:$28 sps:$4 sm:$0xff]  }
 0x145   :  { %2312 = vmatprep.subr.bf16.mxu1 %v2601_v20  ;;  %v2679_v19 = vld [vmem:[%s3559_s3 + $0x66c] ss:$28 sps:$4 sm:$0xff]  }
 0x146   :  { %v2677_v20 = vld [vmem:[%s3559_s3 + $0x668] ss:$28 sps:$4 sm:$0xff]  }
 0x147   :  { %1911 = vmatmul.mubr.bf16.vlgmr.msra.gmra.mrb[12].mxu1 %v3024_v32  ;;  %1813 = vmatpush1.bf16.msra.mxu0 %v2598_v21  ;;  %v2682_v21 = vld [vmem:[%s3559_s3 + $0x6a4] ss:$28 sps:$4 sm:$0xff]  }
 0x148   :  { %2313 = vmatpush3.bf16.msra.mxu1 %v2602_v22  ;;  %1950 = vmatprep.mubr.bf16.mxu1 %v3056_v47  ;;  %v2680_v22 = vld [vmem:[%s3559_s3 + $0x6a0] ss:$28 sps:$4 sm:$0xff]  }
 0x149   :  { %1814 = vmatprep.subr.bf16.mxu0 %v2605_v23  ;;  %2314 = vmatprep.subr.bf16.mxu1 %v2606_v25  ;;  %v2685_v23 = vld [vmem:[%s3559_s3 + $0x6dc] ss:$28 sps:$4 sm:$0xff]  }
 0x14a   :  { %v2683_v25 = vld [vmem:[%s3559_s3 + $0x6d8] ss:$28 sps:$4 sm:$0xff]  }
 0x14b   :  { %1815 = vmatpush1.bf16.msra.mxu0 %v2603_v26  ;;  %v3524_v26 = vld [vmem:[%s3560_s4] sm:$0x7f] }
 0x14c   :  { %2315 = vmatpush3.bf16.msra.mxu1 %v2607_v29  ;;  %1816 = vmatprep.subr.bf16.mxu0 %v2610_v30  ;;  %v448_v29 = vrot.slane %v3524_v26, %v35_v14  ;;  %v456_v30 = vrot.slane %v3524_v26, %v43_v27 }
 0x14d   :  { %2316 = vmatprep.subr.bf16.mxu1 %v2611_v31  ;;  %v452_v31 = vrot.slane %v3524_v26, %v39_v16 }
 0x14f   :  { %1817 = vmatpush1.bf16.msra.mxu0 %v2608_v33 }
 0x150   :  { %2317 = vmatpush3.bf16.msra.mxu1 %v2612_v34  ;;  %1818 = vmatprep.subr.bf16.mxu0 %v2615_v36 }
 0x151   :  { %2318 = vmatprep.subr.bf16.mxu1 %v2616_v37 }
 0x153   :  { %1819 = vmatpush1.bf16.msra.mxu0 %v2613_v38 }
 0x154   :  { %2319 = vmatpush3.bf16.msra.mxu1 %v2617_v15  ;;  %1820 = vmatprep.subr.bf16.mxu0 %v2620_v39 }
 0x155   :  { %2320 = vmatprep.subr.bf16.mxu1 %v2621_v40 }
 0x157   :  { %1821 = vmatpush1.bf16.msra.mxu0 %v2618_v41 }
 0x158   :  { %2321 = vmatpush3.bf16.msra.mxu1 %v2622_v42  ;;  %1822 = vmatprep.subr.bf16.mxu0 %v2625_v35 }
 0x159   :  { %2322 = vmatprep.subr.bf16.mxu1 %v2626_v43 }
 0x15b   :  { %1823 = vmatpush1.bf16.msra.mxu0 %v2623_v44 }
 0x15c   :  { %2323 = vmatpush3.bf16.msra.mxu1 %v2627_v45  ;;  %1824 = vmatprep.subr.bf16.mxu0 %v2630_v46 }
 0x15d   :  { %2324 = vmatprep.subr.bf16.mxu1 %v2631_v48 }
 0x15f   :  { %1825 = vmatpush1.bf16.msra.mxu0 %v2628_v50 }
 0x160   :  { %2325 = vmatpush3.bf16.msra.mxu1 %v2632_v51  ;;  %1826 = vmatprep.subr.bf16.mxu0 %v2635_v52 }
 0x161   :  { %2326 = vmatprep.subr.bf16.mxu1 %v2636_v53 }
 0x163   :  { %1827 = vmatpush1.bf16.msra.mxu0 %v2633_v54 }
 0x164   :  { %2327 = vmatpush3.bf16.msra.mxu1 %v2637_v55  ;;  %1837 = vmatprep.subr.bf16.mxu0 %v2640_v56 }
 0x166   :  { %1829 = vmatmul.mubr.bf16.vlgmr.msra.gmra.mrb[4].mxu0 %v3024_v32  ;;  %v2649_v32 = vld [vmem:[%s3559_s3 + $0x43c] ss:$28 sps:$4 sm:$0xff]  }
 0x167   :  { %1951 = vmatmul.mubr.bf16.vlgmr.msra.gmra.mrb[16].mxu1 %v3227_v49  ;;  %1838 = vmatpush1.bf16.msra.mxu0 %v2638_v57 }
 0x168   :  { %1869 = vmatprep.mubr.bf16.mxu0 %v3056_v47  ;;  %1839 = vmatprep.subr.bf16.mxu0 %v2643_v58  ;;  %v2647_v47 = vld [vmem:[%s3559_s3 + $0x438] ss:$28 sps:$4 sm:$0xff]   ;;  %s2739_s3 = smov [#allocation2]  }
 0x169   :  { %s2040_s4 = sshll.u32 %s2739_s3, 4  ;;  %s2041_s4 = int_to_ptr.vmem [resolvable:$true] %s2040_s4 }
 0x16a   :  { %s2714_s18 = scalar_lea.vmem %s2041_s4, 448  ;;  %p2719_p1 = scmp.lt.s32.totalorder %s2041_s4, %s2041_s4 }
 0x16b   :  { %1840 = vmatpush1.bf16.msra.mxu0 %v2641_v28  ;;  %p2715_p0 = scmp.ne.s32.totalorder %s2041_s4, %s2714_s18  ;;  %p2720_p2 = scmp.lt.s32.totalorder %s2714_s18, %s2714_s18 }
 0x16c   :  { %1841 = vmatprep.subr.bf16.mxu0 %v2646_v59 }
 0x16d   :  { %p2721_p3 = por %p2720_p2, %p2719_p1 }
 0x16f   :  { %1842 = vmatpush1.bf16.msra.mxu0 %v2644_v60  ;;  %p2722_p4 = pnand %p2721_p3, %p2715_p0 }
 0x170   :  { %1843 = vmatprep.subr.bf16.mxu0 %v2649_v32 }
 0x173   :  { %1844 = vmatpush1.bf16.msra.mxu0 %v2647_v47 }
 0x174   :  { %1845 = vmatprep.subr.bf16.mxu0 %v2652_v61 }
 0x177   :  { %1846 = vmatpush1.bf16.msra.mxu0 %v2650_v62 }
 0x178   :  { %1847 = vmatprep.subr.bf16.mxu0 %v2655_v63 }
 0x17b   :  { %1848 = vmatpush1.bf16.msra.mxu0 %v2653_v0 }
 0x17c   :  { %1849 = vmatprep.subr.bf16.mxu0 %v2658_v1 }
 0x17f   :  { %1850 = vmatpush1.bf16.msra.mxu0 %v2656_v2 }
 0x180   :  { %1851 = vmatprep.subr.bf16.mxu0 %v2661_v3 }
 0x183   :  { %1852 = vmatpush1.bf16.msra.mxu0 %v2659_v4 }
 0x184   :  { %1853 = vmatprep.subr.bf16.mxu0 %v2664_v5 }
 0x187   :  { %1854 = vmatpush1.bf16.msra.mxu0 %v2662_v6  ;;  %v471_v6 = vsub.s32 6, %v2997_v13 }
 0x188   :  { %1855 = vmatprep.subr.bf16.mxu0 %v2667_v7 }
 0x189   :  { %v472_v7 = vrot.slane %v3524_v26, %v471_v6 }
 0x18b   :  { %1856 = vmatpush1.bf16.msra.mxu0 %v2665_v8 }
 0x18c   :  { %1857 = vmatprep.subr.bf16.mxu0 %v2670_v9 }
 0x18f   :  { %1858 = vmatpush1.bf16.msra.mxu0 %v2668_v10 }
 0x190   :  { %1859 = vmatprep.subr.bf16.mxu0 %v2673_v11 }
 0x193   :  { %1860 = vmatpush1.bf16.msra.mxu0 %v2671_v12 }
 0x194   :  { %1861 = vmatprep.subr.bf16.mxu0 %v2676_v17 }
 0x197   :  { %1862 = vmatpush1.bf16.msra.mxu0 %v2674_v18 }
 0x198   :  { %1863 = vmatprep.subr.bf16.mxu0 %v2679_v19 }
 0x19b   :  { %1864 = vmatpush1.bf16.msra.mxu0 %v2677_v20 }
 0x19c   :  { %1865 = vmatprep.subr.bf16.mxu0 %v2682_v21 }
 0x19f   :  { %1866 = vmatpush1.bf16.msra.mxu0 %v2680_v22 }
 0x1a0   :  { %1867 = vmatprep.subr.bf16.mxu0 %v2685_v23 }
 0x1a3   :  { %1868 = vmatpush1.bf16.msra.mxu0 %v2683_v25 }
 0x1a6   :  { %1870 = vmatmul.mubr.bf16.vlgmr.msra.gmra.mrb[4].mxu0 %v3227_v49  ;;  %v460_v49 = vrot.slane %v3524_v26, %v47_v24 }
 0x1f9   :  { %v1707_v33 = vpop.f32.mrb[0].mxu0  ;;  %v1789_v34 = vpop.f32.mrb[8].mxu1 }
 0x1fa   :  { %v2334_v36 = vadd.f32 %v1707_v33, %v448_v29  ;;  %v2336_v37 = vadd.f32 %v1789_v34, %v456_v30  ;;  %v1709_v38 = vpop.f32.mrb[1].mxu0  ;;  %v1791_v15 = vpop.f32.mrb[9].mxu1  ;;  %v463_v30 = vsub.s32 4, %v2997_v13 }
 0x1fb   :  { %v2335_v39 = vadd.f32 %v1709_v38, %v452_v31  ;;  %v2337_v14 = vadd.f32 %v1791_v15, %v460_v49  ;;  %v1711_v40 = vpop.f32.mrb[2].mxu0  ;;  %v1793_v41 = vpop.f32.mrb[10].mxu1  ;;  %v467_v31 = vsub.s32 5, %v2997_v13 }
 0x1fc   :  { %v1958_v42 = vsub.f32 0.0, %v2334_v36  ;;  %v1960_v27 = vsub.f32 0.0, %v2336_v37  ;;  %v1712_v35 = vpop.f32.mrb[3].mxu0  ;;  %v1794_v43 = vpop.f32.mrb[11].mxu1  ;;  %v464_v49 = vrot.slane %v3524_v26, %v463_v30 }
 0x1fd   :  { %v1959_v44 = vsub.f32 0.0, %v2335_v39  ;;  %v1961_v16 = vsub.f32 0.0, %v2337_v14  ;;  %v468_v33 = vrot.slane %v3524_v26, %v467_v31 }
 0x1fe   :  { %v1965_v45 = vmul.f32 1.442695, %v1958_v42  ;;  %v1969_v46 = vmul.f32 1.442695, %v1960_v27 }
 0x1ff   :  { %v1967_v48 = vmul.f32 1.442695, %v1959_v44  ;;  %v1971_v24 = vmul.f32 1.442695, %v1961_v16 }
 0x200   :  { %2686 = vpow2.f32 %v1965_v45 }
 0x201   :  { %2688 = vpow2.f32 %v1969_v46 }
 0x202   :  { %2690 = vpow2.f32 %v1967_v48 }
 0x203   :  { %2692 = vpow2.f32 %v1971_v24 }
 0x20a   :  { %v2687_v50 = vpop.eup %2686 }
 0x20b   :  { %v2689_v51 = vpop.eup %2688  ;;  %v1979_v52 = vadd.f32 1.0, %v2687_v50 }
 0x20c   :  { %v2691_v53 = vpop.eup %2690  ;;  %v1981_v54 = vadd.f32 1.0, %v2689_v51 }
 0x20d   :  { %v2693_v55 = vpop.eup %2692  ;;  %2694 = vrcp.f32 %v1979_v52  ;;  %v1980_v56 = vadd.f32 1.0, %v2691_v53 }
 0x20e   :  { %2696 = vrcp.f32 %v1981_v54  ;;  %v1982_v57 = vadd.f32 1.0, %v2693_v55 }
 0x20f   :  { %2698 = vrcp.f32 %v1980_v56 }
 0x210   :  { %2700 = vrcp.f32 %v1982_v57 }
 0x217   :  { %v2695_v58 = vpop.eup %2694 }
 0x218   :  { %v2697_v28 = vpop.eup %2696  ;;  %v1993_v59 = vmin.f32 %v2695_v58, 1.0 }
 0x219   :  { %v2699_v60 = vpop.eup %2698  ;;  %v1995_v32 = vmin.f32 %v2697_v28, 1.0 }
 0x21a   :  { %v2701_v47 = vpop.eup %2700  ;;  %v1994_v61 = vmin.f32 %v2699_v60, 1.0  ;;  %v2306_v62 = vpop.f32.mrb[12].mxu1 }
 0x21b   :  { %v1996_v63 = vmin.f32 %v2701_v47, 1.0  ;;  %v2307_v0 = vpop.f32.mrb[13].mxu1 }
 0x21c   :  { %v2308_v1 = vadd.f32 %v2307_v0, %v2306_v62  ;;  %v2309_v2 = vpop.f32.mrb[14].mxu1  ;;  %v2286_v3 = vpack.c.bf16 %v1994_v61, %v1993_v59 }
 0x21d   :  { %v2310_v4 = vpop.f32.mrb[15].mxu1  ;;  %v2287_v5 = vpack.c.bf16 %v1996_v63, %v1995_v32 }
 0x21e   :  { %2029 = vst [vmem:[#allocation2] sm:$0xff] %v2286_v3  ;;  %v1913_v10 = vadd.f32 %v2308_v1, %v472_v7 }
 0x21f   :  { %2030 = vst [vmem:[#allocation2 + $0x8] sm:$0xff] %v2287_v5 }
 0x23a   :  { %v2328_v8 = vpop.f32.mrb[16].mxu1 }
 0x23b   :  { %v2329_v9 = vpop.f32.mrb[17].mxu1 }
 0x23c   :  { %v2330_v11 = vadd.f32 %v2329_v9, %v2328_v8  ;;  %v2331_v12 = vpop.f32.mrb[18].mxu1 }
 0x23d   :  { %v2332_v17 = vpop.f32.mrb[19].mxu1 }
 0x23e   :  { %v1953_v18 = vadd.f32 %v2330_v11, %v1913_v10 }
 0x240   :  { %v1964_v19 = vsub.f32 0.0, %v1953_v18 }
 0x242   :  { %v1977_v20 = vmul.f32 1.442695, %v1964_v19 }
 0x244   :  { %2702 = vpow2.f32 %v1977_v20 }
 0x24e   :  { %v2703_v21 = vpop.eup %2702 }
 0x24f   :  { %v1985_v22 = vadd.f32 1.0, %v2703_v21 }
 0x251   :  { %2704 = vrcp.f32 %v1985_v22 }
 0x25b   :  { %v2705_v23 = vpop.eup %2704 }
 0x25c   :  { %v1999_v25 = vmin.f32 %v2705_v23, 1.0 }
 0x25e   :  { %v2289_v29 = vpack.c.bf16 %v1999_v25, %v1999_v25 }
 0x260   :  { %2033 = vst.msk [vmem:[#allocation2 + $0x18] sm:$0xf] %vm2032_vm1, %v2289_v29 }
 0x279   :  { %v1871_v34 = vpop.f32.mrb[4].mxu0 }
 0x27a   :  { %v2338_v36 = vadd.f32 %v1871_v34, %v464_v49  ;;  %v1873_v37 = vpop.f32.mrb[5].mxu0 }
 0x27b   :  { %v2339_v38 = vadd.f32 %v1873_v37, %v468_v33  ;;  %v1875_v15 = vpop.f32.mrb[6].mxu0 }
 0x27c   :  { %v1962_v39 = vsub.f32 0.0, %v2338_v36  ;;  %v1876_v14 = vpop.f32.mrb[7].mxu0 }
 0x27d   :  { %v1963_v40 = vsub.f32 0.0, %v2339_v38 }
 0x27e   :  { %v1973_v41 = vmul.f32 1.442695, %v1962_v39 }
 0x27f   :  { %v1975_v42 = vmul.f32 1.442695, %v1963_v40 }
 0x280   :  { %2706 = vpow2.f32 %v1973_v41 }
 0x281   :  { %2708 = vpow2.f32 %v1975_v42 }
 0x28a   :  { %v2707_v27 = vpop.eup %2706 }
 0x28b   :  { %v2709_v35 = vpop.eup %2708  ;;  %v1983_v43 = vadd.f32 1.0, %v2707_v27 }
 0x28c   :  { %v1984_v13 = vadd.f32 1.0, %v2709_v35 }
 0x28d   :  { %2710 = vrcp.f32 %v1983_v43 }
 0x28e   :  { %2712 = vrcp.f32 %v1984_v13 }
 0x297   :  { %v2711_v44 = vpop.eup %2710 }
 0x298   :  { %v2713_v26 = vpop.eup %2712  ;;  %v1997_v16 = vmin.f32 %v2711_v44, 1.0 }
 0x299   :  { %v1998_v45 = vmin.f32 %v2713_v26, 1.0 }
 0x29b   :  { %v2288_v46 = vpack.c.bf16 %v1998_v45, %v1997_v16 }
 0x29d   :  { %2031 = vst [vmem:[#allocation2 + $0x10] sm:$0xff] %v2288_v46 }
 0x29e   :  { %2725 = shalt.err (!%p2722_p4)
}
 0x29f   :  { %s2726_s21 = scalar_lea.hbm %s3561_s5, 448 }
 0x2a0   :  { %p2727_p5 = scmp.ne.s32.totalorder %s3561_s5, %s2726_s21  ;;  %p2730_p6 = scmp.lt.u32.totalorder %s2726_s21, %s3561_s5 }
 0x2a2   :  { %p2732_p7 = pnand %p2730_p6, %p2727_p5 }
 0x2a4   :  { %2735 = shalt.err (!%p2732_p7)
}
 0x2a5   :  { %2043 = dma.vmem_to_hbm [thread:$0]  %s2041_s4, 448, %s3561_s5, [#allocation3]  }
 0x2a6   :  { %2736 = dma.done.wait [#allocation3], 448  }
 0x2a7   :  { %2737 = vsyncadd [#allocation3], 4294966848 }
 0x2a8   :  { %2047 = vsyncpa [#allocation3], 1 }

</bundles_post_ra>
